<compile_context>
chip_gen: v7x
topology: tpu7x:2x2x1
jax: 0.10.0
libtpu: 0.0.40
codegen_flags: <defaults>
</compile_context>

<pallas_src>
import jax
import jax.numpy as jnp
from jax.experimental import pallas as pl
from jax.experimental.pallas import tpu as pltpu


def _round_up(x, m):
    return (x + m - 1) // m * m


# ---------------------------------------------------------------------------
# Kernel 1 (hoisted, runs once): one fused MXU pass over X
#     Y = X @ [W2 | W1]   ->   potential = X @ W2 ,  root = X @ W1
# ---------------------------------------------------------------------------
def _xw_kernel(x_ref, wcat_ref, pot_ref, root_ref):
    c_out_p = pot_ref.shape[1]
    y = jnp.dot(x_ref[...], wcat_ref[...], preferred_element_type=jnp.float32)
    pot_ref[...] = y[:, :c_out_p]          # X @ W2  (lane-aligned split)
    root_ref[...] = y[:, c_out_p:]         # X @ W1


# ---------------------------------------------------------------------------
# Kernel 2: K-tiled aggregation with f32 accumulator
#     out[i] = sum_k A[i, k] @ potential[k]   (+ root[i] + bias at k == last)
# grid = (row tiles "parallel", k tiles "arbitrary")
# ---------------------------------------------------------------------------
def _agg_kernel(a_ref, pot_ref, root_ref, b_ref, o_ref, acc_ref):
    k = pl.program_id(1)

    @pl.when(k == 0)
    def _():
        acc_ref[...] = jnp.zeros_like(acc_ref)

    # A may arrive in a narrower on-wire dtype (bf16 exact for 0/1 adjacency);
    # upcast in-kernel so the accumulation stays f32-exact.
    acc_ref[...] += jnp.dot(a_ref[...].astype(jnp.float32), pot_ref[...],
                            preferred_element_type=jnp.float32)

    @pl.when(k == pl.num_programs(1) - 1)
    def _():
        o_ref[...] = (acc_ref[...] + root_ref[...] + b_ref[...]).astype(o_ref.dtype)


def basic_graph_convolution(X, A, W2, W1, bias, *, a_dtype=jnp.float32):
    """X: [N, C_in], A: [N, N], W2/W1: [C_in, C_out], bias: [C_out] -> [N, C_out]."""
    f32 = jnp.float32
    N, c_in = X.shape
    c_out = W2.shape[1]

    # Lane-dense output: pad C_out to a multiple of 128 (sliced off below).
    c_out_p = _round_up(c_out, 128)

    # Tile selection.
    #  * Small / medium graphs: single (n_p, n_p) A tile -> one grid point.
    #  * Large graphs: (bn, bk) A tiles; VMEM use is O(bn*bk).
    if N <= 1024:
        n_p = _round_up(N, 8)
        bn = bk = n_p
    else:
        bn, bk = 256, 1024                 # f32 A block = 1 MiB (2 MiB dbl-buffered)
        n_p = _round_up(N, 1024)           # lcm(bn, bk)
    num_row_tiles = n_p // bn
    num_k_tiles = n_p // bk

    # Row tile for the hoisted X @ Wcat pass.
    bx = n_p if n_p <= 512 else 512
    num_x_tiles = n_p // bx

    a_itemsize = jnp.dtype(a_dtype).itemsize

    # ---- Pad only when needed (avoid a full O(N^2) HBM copy of A) ----------
    if n_p == N:
        A_p = A.astype(a_dtype)
        X_p = X.astype(f32)
    else:
        A_p = jnp.pad(A.astype(a_dtype), ((0, n_p - N), (0, n_p - N)))
        X_p = jnp.pad(X.astype(f32), ((0, n_p - N), (0, 0)))

    # Fused, lane-padded weights [W2 | W1] and lane-padded bias.
    w2_p = jnp.zeros((c_in, c_out_p), f32).at[:, :c_out].set(W2.astype(f32))
    w1_p = jnp.zeros((c_in, c_out_p), f32).at[:, :c_out].set(W1.astype(f32))
    w_cat = jnp.concatenate([w2_p, w1_p], axis=1)            # (c_in, 2*c_out_p)
    bias_p = jnp.zeros((1, c_out_p), f32).at[0, :c_out].set(bias.astype(f32))

    # ---- Kernel 1: potential / root, computed exactly once ------------------
    xw_cost = pl.CostEstimate(
        flops=2 * n_p * c_in * (2 * c_out_p),
        transcendentals=0,
        bytes_accessed=4 * (n_p * c_in
                            + num_x_tiles * c_in * 2 * c_out_p
                            + 2 * n_p * c_out_p))
    potential, root = pl.pallas_call(
        _xw_kernel,
        out_shape=(jax.ShapeDtypeStruct((n_p, c_out_p), f32),
                   jax.ShapeDtypeStruct((n_p, c_out_p), f32)),
        grid=(num_x_tiles,),
        in_specs=[
            pl.BlockSpec((bx, c_in), lambda i: (i, 0)),              # X row tile
            pl.BlockSpec((c_in, 2 * c_out_p), lambda i: (0, 0)),     # Wcat
        ],
        out_specs=(pl.BlockSpec((bx, c_out_p), lambda i: (i, 0)),    # potential
                   pl.BlockSpec((bx, c_out_p), lambda i: (i, 0))),   # root
        compiler_params=pltpu.CompilerParams(
            dimension_semantics=("parallel",)),
        cost_estimate=xw_cost,
    )(X_p, w_cat)

    # ---- Kernel 2: K-tiled A @ potential + root + bias ----------------------
    # Double-buffered per-step block bytes -> explicit scoped-VMEM budget.
    blk_bytes = (2 * bn * bk * a_itemsize          # A tile
                 + 2 * bk * c_out_p * 4            # potential tile
                 + 2 * bn * c_out_p * 4            # root tile
                 + 2 * c_out_p * 4                 # bias
                 + 2 * bn * c_out_p * 4            # output tile
                 + bn * c_out_p * 4)               # accumulator scratch
    vmem_limit = int(min(max(2 * blk_bytes, 16 * 1024 * 1024), 48 * 1024 * 1024))

    agg_cost = pl.CostEstimate(
        flops=2 * n_p * n_p * c_out_p,
        transcendentals=0,
        bytes_accessed=(n_p * n_p * a_itemsize              # A streamed once
                        + num_row_tiles * n_p * c_out_p * 4  # potential re-read/row tile
                        + n_p * c_out_p * 4                  # root
                        + c_out_p * 4                        # bias
                        + n_p * c_out_p * 4))                # output

    out_p = pl.pallas_call(
        _agg_kernel,
        out_shape=jax.ShapeDtypeStruct((n_p, c_out_p), f32),
        grid=(num_row_tiles, num_k_tiles),
        in_specs=[
            pl.BlockSpec((bn, bk), lambda i, k: (i, k)),             # A tile
            pl.BlockSpec((bk, c_out_p), lambda i, k: (k, 0)),        # potential
            pl.BlockSpec((bn, c_out_p), lambda i, k: (i, 0)),        # root
            pl.BlockSpec((1, c_out_p), lambda i, k: (0, 0)),         # bias
        ],
        out_specs=pl.BlockSpec((bn, c_out_p), lambda i, k: (i, 0)),
        scratch_shapes=[pltpu.VMEM((bn, c_out_p), jnp.float32)],
        compiler_params=pltpu.CompilerParams(
            dimension_semantics=("parallel", "arbitrary"),
            vmem_limit_bytes=vmem_limit),
        cost_estimate=agg_cost,
    )(A_p, potential, root, bias_p)

    return out_p[:N, :c_out]


if __name__ == "__main__":
    # Module config: in_channels=16, out_channels=32; graph with N=8 nodes.
    N, C_IN, C_OUT = 8, 16, 32

    key = jax.random.PRNGKey(0)
    k_x, k_a, k_w2, k_w1 = jax.random.split(key, 4)

    # Inputs
    X = jax.random.normal(k_x, (N, C_IN), dtype=jnp.float32)
    # Symmetric-ish 0/1 adjacency with self loops.
    A_raw = (jax.random.uniform(k_a, (N, N)) > 0.5).astype(jnp.float32)
    A = jnp.clip(A_raw + A_raw.T + jnp.eye(N, dtype=jnp.float32), 0.0, 1.0)

    # Parameters (torch.rand -> uniform [0,1); bias zeros), deterministic.
    W2 = jax.random.uniform(k_w2, (C_IN, C_OUT), dtype=jnp.float32)
    W1 = jax.random.uniform(k_w1, (C_IN, C_OUT), dtype=jnp.float32)
    bias = jnp.zeros((C_OUT,), dtype=jnp.float32)

    out = basic_graph_convolution(X, A, W2, W1, bias)
    out = jax.block_until_ready(out)

    # Reference check in plain JAX
    ref = A @ (X @ W2) + X @ W1 + bias
    assert out.shape == (N, C_OUT)
    assert jnp.allclose(out, ref, atol=1e-4, rtol=1e-4)

    print("KERNEL_OK")
</pallas_src>

<mosaic_0001>
module attributes {stable_mosaic.version = 11 : i64} {
  func.func @_xw_kernel(%arg0: i32, %arg1: memref<8x16xf32, #tpu.memory_space<vmem>>, %arg2: memref<16x256xf32, #tpu.memory_space<vmem>>, %arg3: memref<8x128xf32, #tpu.memory_space<vmem>>, %arg4: memref<8x128xf32, #tpu.memory_space<vmem>>) attributes {dimension_semantics = [#tpu.dimension_semantics<parallel>], iteration_bounds = array<i64: 1>, scalar_prefetch = 0 : i64, scratch_operands = 0 : i64, tpu.core_type = #tpu.core_type<tc>, window_params = [{transform_indices = @transform_0, window_bounds = array<i64: 8, 16>}, {pipeline_mode = #tpu.pipeline_mode<synchronous>, transform_indices = @transform_1, window_bounds = array<i64: 16, 256>}, {transform_indices = @transform_2, window_bounds = array<i64: 8, 128>}, {transform_indices = @transform_3, window_bounds = array<i64: 8, 128>}]} {
    %c0 = arith.constant 0 : index
    %c0_0 = arith.constant 0 : index
    %0 = vector.load %arg1[%c0, %c0_0] : memref<8x16xf32, #tpu.memory_space<vmem>>, vector<8x16xf32>
    %c0_1 = arith.constant 0 : index
    %c0_2 = arith.constant 0 : index
    %1 = vector.load %arg2[%c0_1, %c0_2] : memref<16x256xf32, #tpu.memory_space<vmem>>, vector<16x256xf32>
    %cst = arith.constant dense<0.000000e+00> : vector<8x256xf32>
    %2 = tpu.matmul %0, %1, %cst {dimension_numbers = #tpu.dot_dimension_numbers<[1], [0], [0], [1], [0, 0, 1, 1], [], []>} : vector<8x16xf32>, vector<16x256xf32>, vector<8x256xf32> -> vector<8x256xf32>
    %3 = vector.extract_strided_slice %2 {offsets = [0, 0], sizes = [8, 128], strides = [1, 1]} : vector<8x256xf32> to vector<8x128xf32>
    %c0_3 = arith.constant 0 : index
    %c0_4 = arith.constant 0 : index
    %4 = vector.load %arg3[%c0_3, %c0_4] : memref<8x128xf32, #tpu.memory_space<vmem>>, vector<8x128xf32>
    tpu.vector_store %arg3[%c0_3, %c0_4], %3 {strides = array<i32>} : memref<8x128xf32, #tpu.memory_space<vmem>>, vector<8x128xf32>,
    %5 = vector.extract_strided_slice %2 {offsets = [0, 128], sizes = [8, 128], strides = [1, 1]} : vector<8x256xf32> to vector<8x128xf32>
    %c0_5 = arith.constant 0 : index
    %c0_6 = arith.constant 0 : index
    %6 = vector.load %arg4[%c0_5, %c0_6] : memref<8x128xf32, #tpu.memory_space<vmem>>, vector<8x128xf32>
    tpu.vector_store %arg4[%c0_5, %c0_6], %5 {strides = array<i32>} : memref<8x128xf32, #tpu.memory_space<vmem>>, vector<8x128xf32>,
    return
  }
  func.func @transform_0(%arg0: i32) -> (i32, i32) {
    %c0_i32 = arith.constant 0 : i32
    %c0_i32_0 = arith.constant 0 : i32
    return %arg0, %c0_i32 : i32, i32
  }
  func.func @transform_1(%arg0: i32) -> (i32, i32) {
    %c0_i32 = arith.constant 0 : i32
    %c0_i32_0 = arith.constant 0 : i32
    %c0_i32_1 = arith.constant 0 : i32
    return %c0_i32, %c0_i32_0 : i32, i32
  }
  func.func @transform_2(%arg0: i32) -> (i32, i32) {
    %c0_i32 = arith.constant 0 : i32
    %c0_i32_0 = arith.constant 0 : i32
    return %arg0, %c0_i32 : i32, i32
  }
  func.func @transform_3(%arg0: i32) -> (i32, i32) {
    %c0_i32 = arith.constant 0 : i32
    %c0_i32_0 = arith.constant 0 : i32
    return %arg0, %c0_i32 : i32, i32
  }
}

</mosaic_0001>

<bundles_post_ra>
// kernel: tpu_custom_call.1
= control target key start
LH: loop header
LB: loop body
LE: loop exit
PB: predicated region body
PF: predicated region fallthrough
CT: control target
= control target key end

     0   :  { %9 = vsyncpa [#allocation3], 0  ;;  %s350_s0 = inlined_call_operand.hbm [shape: f32[8,16], index: 0, kind: input, shape index: {}]   ;;  %s351_s1 = inlined_call_operand.hbm [shape: f32[16,256], index: 1, kind: input, shape index: {}]   ;;  %s352_s2 = inlined_call_operand.hbm [shape: f32[8,128], index: 2, kind: output, shape index: {0}]   ;;  %s353_s3 = inlined_call_operand.hbm [shape: f32[8,128], index: 3, kind: output, shape index: {1}]  }
   0x1   :  { %10 = vsyncpa [#allocation6], 0 }
   0x2   :  { %11 = vsyncpa [#allocation4], 0 }
   0x3   :  { %12 = vsyncpa [#allocation9], 0  ;;  %s261_s12 = smov [#allocation2]   ;;  %s262_s14 = smov [#allocation5]  }
   0x4   :  { %s19_s13 = sshll.u32 %s261_s12, 4  ;;  %s28_s15 = sshll.u32 %s262_s14, 4  ;;  %s20_s13 = int_to_ptr.vmem [resolvable:$true] %s19_s13  ;;  %s288_s15 = int_to_ptr.vmem [resolvable:$true] %s28_s15 }
   0x5   :  { %s165_s18 = scalar_lea.hbm %s350_s0, 128 }
   0x6   :  { %p166_p0 = scmp.ne.s32.totalorder %s350_s0, %s165_s18  ;;  %p169_p1 = scmp.lt.u32.totalorder %s165_s18, %s350_s0 }
   0x8   :  { %p171_p2 = pnand %p169_p1, %p166_p0 }
   0xa   :  { %174 = shalt.err (!%p171_p2)
}
   0xb   :  { %s175_s23 = scalar_lea.vmem %s20_s13, 128  ;;  %p180_p4 = scmp.lt.s32.totalorder %s20_s13, %s20_s13 }
   0xc   :  { %p176_p3 = scmp.ne.s32.totalorder %s20_s13, %s175_s23  ;;  %p181_p5 = scmp.lt.s32.totalorder %s175_s23, %s175_s23 }
   0xe   :  { %p182_p6 = por %p181_p5, %p180_p4 }
  0x10   :  { %p183_p7 = pnand %p182_p6, %p176_p3 }
  0x12   :  { %186 = shalt.err (!%p183_p7)
}
  0x13   :  { %22 = dma.hbm_to_vmem [thread:$0]  %s350_s0, 128, %s20_s13, [#allocation3]  }
  0x14   :  { %s187_s28 = scalar_lea.hbm %s351_s1, 512 }
  0x15   :  { %p188_p8 = scmp.ne.s32.totalorder %s351_s1, %s187_s28  ;;  %p191_p9 = scmp.lt.u32.totalorder %s187_s28, %s351_s1 }
  0x17   :  { %p193_p10 = pnand %p191_p9, %p188_p8 }
  0x19   :  { %196 = shalt.err (!%p193_p10)
}
  0x1a   :  { %s197_s6 = scalar_lea.vmem %s288_s15, 512  ;;  %p202_p12 = scmp.lt.s32.totalorder %s288_s15, %s288_s15 }
  0x1b   :  { %p198_p11 = scmp.ne.s32.totalorder %s288_s15, %s197_s6  ;;  %p203_p13 = scmp.lt.s32.totalorder %s197_s6, %s197_s6 }
  0x1d   :  { %p204_p0 = por %p203_p13, %p202_p12 }
  0x1f   :  { %p205_p1 = pnand %p204_p0, %p198_p11 }
  0x21   :  { %208 = shalt.err (!%p205_p1)
}
  0x22   :  { %s263_s0 = smov 256   ;;  %s264_s7 = smov 16  }
  0x23   :  { %34 = dma.hbm_to_vmem [thread:$0]  %s351_s1, 512, %s288_s15, [#allocation6], %s263_s0, %s263_s0, %s264_s7  }
  0x24   :  { %253 = dma.done.wait [#allocation3], 128  }
  0x25   :  { %254 = vsyncadd [#allocation3], 4294967168 }
  0x26   :  { %255 = dma.done.wait [#allocation6], 512  }
  0x27   :  { %256 = vsyncadd [#allocation6], 4294966784  ;;  %v265_v0 = vmov 0.0   ;;  %v43_v1 = vld [vmem:[#allocation5 + $0x8] sm:$0xff]  ;;  %v45_v2 = vld [vmem:[#allocation5 + $0x18] sm:$0xff]  ;;  %vm46_vm0 = vcmask 130048  }
  0x28   :  { %114 = vmatprep.mubr.f32.mxu0 %v265_v0  ;;  %v42_v3 = vld [vmem:[#allocation5] sm:$0xff]  ;;  %v154_v4 = vpack.c.bf16 %v45_v2, %v43_v1  ;;  %v44_v5 = vld [vmem:[#allocation5 + $0x10] sm:$0xff]  ;;  %v41_v7 = vld [vmem:[#allocation2] sm:$0xff]  ;;  %s266_s10 = smov [#allocation7]   ;;  %s267_s1 = smov [#allocation8]  }
  0x29   :  { %v156_v6 = vpack.c.bf16 %v44_v5, %v42_v3  ;;  %s129_s11 = sshll.u32 %s266_s10, 4  ;;  %s139_s12 = sshll.u32 %s267_s1, 4  ;;  %s130_s11 = int_to_ptr.vmem [resolvable:$true] %s129_s11  ;;  %s319_s12 = int_to_ptr.vmem [resolvable:$true] %s139_s12 }
  0x2a   :  { %155 = vmatprep.subr.bf16.mxu0 %v154_v4  ;;  %s209_s13 = scalar_lea.vmem %s130_s11, 128  ;;  %p214_p3 = scmp.lt.s32.totalorder %s130_s11, %s130_s11 }
  0x2b   :  { %157 = vmatpush1.bf16.msra.mxu0 %v156_v6  ;;  %p210_p2 = scmp.ne.s32.totalorder %s130_s11, %s209_s13  ;;  %p215_p4 = scmp.lt.s32.totalorder %s209_s13, %s209_s13 }
  0x2d   :  { %p216_p5 = por %p215_p4, %p214_p3 }
  0x2e   :  { %153 = vmatmul.mubr.msk.f32.vlgmr.msra.gmra.mrb[0].mxu0 %vm46_vm0, %v41_v7 }
  0x2f   :  { %p217_p6 = pnand %p216_p5, %p210_p2 }
 0x101   :  { %v116_v8 = vpop.f32.mrb[0].mxu0 }
 0x102   :  { %121 = vst [vmem:[#allocation7] sm:$0xff] %v116_v8  ;;  %v118_v9 = vpop.f32.mrb[1].mxu0 }
 0x103   :  { %122 = vst [vmem:[#allocation8] sm:$0xff] %v118_v9 }
 0x104   :  { %220 = shalt.err (!%p217_p6)
}
 0x105   :  { %s221_s16 = scalar_lea.hbm %s352_s2, 128 }
 0x106   :  { %p222_p7 = scmp.ne.s32.totalorder %s352_s2, %s221_s16  ;;  %p225_p8 = scmp.lt.u32.totalorder %s221_s16, %s352_s2 }
 0x108   :  { %p227_p9 = pnand %p225_p8, %p222_p7 }
 0x10a   :  { %230 = shalt.err (!%p227_p9)
}
 0x10b   :  { %132 = dma.vmem_to_hbm [thread:$0]  %s130_s11, 128, %s352_s2, [#allocation4]  }
 0x10c   :  { %s231_s23 = scalar_lea.vmem %s319_s12, 128  ;;  %p236_p11 = scmp.lt.s32.totalorder %s319_s12, %s319_s12 }
 0x10d   :  { %p232_p10 = scmp.ne.s32.totalorder %s319_s12, %s231_s23  ;;  %p237_p12 = scmp.lt.s32.totalorder %s231_s23, %s231_s23 }
 0x10f   :  { %p238_p13 = por %p237_p12, %p236_p11 }
 0x111   :  { %p239_p0 = pnand %p238_p13, %p232_p10 }
 0x113   :  { %242 = shalt.err (!%p239_p0)
}
 0x114   :  { %s243_s26 = scalar_lea.hbm %s353_s3, 128 }
 0x115   :  { %p244_p1 = scmp.ne.s32.totalorder %s353_s3, %s243_s26  ;;  %p247_p2 = scmp.lt.u32.totalorder %s243_s26, %s353_s3 }
 0x117   :  { %p249_p3 = pnand %p247_p2, %p244_p1 }
 0x119   :  { %252 = shalt.err (!%p249_p3)
}
 0x11a   :  { %142 = dma.vmem_to_hbm [thread:$0]  %s319_s12, 128, %s353_s3, [#allocation9]  }
 0x11b   :  { %257 = dma.done.wait [#allocation4], 128  }
 0x11c   :  { %258 = vsyncadd [#allocation4], 4294967168 }
 0x11d   :  { %259 = dma.done.wait [#allocation9], 128  }
 0x11e   :  { %260 = vsyncadd [#allocation9], 4294967168 }
 0x11f   :  { %149 = vsyncpa [#allocation3], 1 }
 0x120   :  { %150 = vsyncpa [#allocation6], 1 }
 0x121   :  { %151 = vsyncpa [#allocation4], 1 }
 0x122   :  { %152 = vsyncpa [#allocation9], 1 }

</bundles_post_ra>
